<compile_context>
chip_gen: v6e
topology: v6e:2x2x1
jax: 0.10.0
libtpu: 0.0.40
codegen_flags: <defaults>
</compile_context>

<pallas_src>
import math
import functools

import jax
import jax.numpy as jnp
from jax.experimental import pallas as pl
from jax.experimental.pallas import tpu as pltpu

LN_EPS = 1e-5  # PyTorch nn.LayerNorm default


def _layernorm(x):
    # LayerNorm without affine params (elementwise_affine=False), biased variance.
    mu = jnp.mean(x, axis=-1, keepdims=True)
    var = jnp.mean((x - mu) ** 2, axis=-1, keepdims=True)
    return (x - mu) * jax.lax.rsqrt(var + LN_EPS)


def _encoder2_kernel(num_heads, head_dim,
                     x_ref, m_ref,
                     wq_ref, wk_ref, wv_ref, wo_ref,
                     w1_ref, b1_ref, w2_ref, b2_ref,
                     o_ref):
    x_f32 = x_ref[0].astype(jnp.float32)      # (TQ, D) query tile
    x_bf = x_f32.astype(jnp.bfloat16)
    m_bf = m_ref[0].astype(jnp.bfloat16)      # (LM, D) memory

    # --- Cross-attention projections (bf16 operands, f32 MXU accumulation) ---
    q = jnp.dot(x_bf, wq_ref[...], preferred_element_type=jnp.float32)   # (TQ, D)
    k = jnp.dot(m_bf, wk_ref[...], preferred_element_type=jnp.float32)   # (LM, D)
    v = jnp.dot(m_bf, wv_ref[...], preferred_element_type=jnp.float32)   # (LM, D)

    scale = 1.0 / math.sqrt(head_dim)

    # Residual accumulator: start from x, add each head's Wo-projected output.
    acc = x_f32
    # TODO(synk): for very large LM, tile this loop flash-style (online softmax)
    # instead of materializing the full (TQ, LM) probabilities per head.
    for h in range(num_heads):   # static unroll over heads
        lo = h * head_dim
        hi = lo + head_dim
        qh = (q[:, lo:hi] * scale).astype(jnp.bfloat16)
        kh = k[:, lo:hi].astype(jnp.bfloat16)
        vh = v[:, lo:hi].astype(jnp.bfloat16)
        logits = jnp.dot(qh, kh.T, preferred_element_type=jnp.float32)    # (TQ, LM)
        logits = logits - jnp.max(logits, axis=-1, keepdims=True)
        p = jnp.exp(logits)
        # softmax denominator on the (otherwise idle) EUP slot
        p = p * pl.reciprocal(jnp.sum(p, axis=-1, keepdims=True), approx=True)
        oh = jnp.dot(p.astype(jnp.bfloat16), vh,
                     preferred_element_type=jnp.float32)                  # (TQ, hd)
        # Fold this head's slice of Wo straight into the residual accumulator
        # (sublane slice of Wo; avoids concatenating heads + an extra relayout).
        acc = acc + jnp.dot(oh.astype(jnp.bfloat16), wo_ref[lo:hi, :],
                            preferred_element_type=jnp.float32)

    # --- Residual + LayerNorm 1 (f32) ---
    y = _layernorm(acc)

    # --- FeedForward: Linear -> ReLU -> Linear (bf16 matmuls, f32 accumulate) ---
    # TODO(synk): tile W1/W2 over the hidden dim F for production-size F on v7x (64 MiB VMEM).
    h1 = jnp.dot(y.astype(jnp.bfloat16), w1_ref[...],
                 preferred_element_type=jnp.float32) + b1_ref[...]
    h1 = jnp.maximum(h1, 0.0)
    ff = jnp.dot(h1.astype(jnp.bfloat16), w2_ref[...],
                 preferred_element_type=jnp.float32) + b2_ref[...]

    # --- Residual + LayerNorm 2 (f32) ---
    o_ref[0] = _layernorm(y + ff).astype(o_ref.dtype)


def _pick_query_tile(LQ):
    # Largest power-of-two tile <= 256 that divides LQ (256 rows feed the
    # 2x256x256 MXU on v6e/v7x; 128 already saturates v5e). Fall back to full LQ.
    for cand in (256, 128, 64, 32, 16, 8):
        if LQ % cand == 0:
            return cand
    return LQ


def encoder2_layer(x, mem, params, *, num_heads):
    """x: (B, LQ, D), mem: (B, LM, D). Returns (B, LQ, D)."""
    B, LQ, D = x.shape
    _, LM, _ = mem.shape
    head_dim = D // num_heads
    F = params["w1"].shape[1]
    TQ = _pick_query_tile(LQ)

    kernel = functools.partial(_encoder2_kernel, num_heads, head_dim)

    # Weights feed the MXU: cast once to bf16 (halves weight DMA / VMEM, ~2x MXU
    # rate on v6e/v7x). Biases stay f32 (added to f32 accumulators).
    wq = params["wq"].astype(jnp.bfloat16)
    wk = params["wk"].astype(jnp.bfloat16)
    wv = params["wv"].astype(jnp.bfloat16)
    wo = params["wo"].astype(jnp.bfloat16)
    w1 = params["w1"].astype(jnp.bfloat16)
    w2 = params["w2"].astype(jnp.bfloat16)
    b1 = params["b1"].astype(jnp.float32)
    b2 = params["b2"].astype(jnp.float32)

    def const_spec(shape):
        # full-array weight block; same block index every grid step (stays resident)
        return pl.BlockSpec(shape, lambda b, qi: (0,) * len(shape))

    grid_spec = pltpu.PrefetchScalarGridSpec(
        num_scalar_prefetch=0,
        grid=(B, LQ // TQ),
        in_specs=[
            pl.BlockSpec((1, TQ, D), lambda b, qi: (b, qi, 0)),   # x query tile
            pl.BlockSpec((1, LM, D), lambda b, qi: (b, 0, 0)),    # memory (per batch)
            const_spec((D, D)),   # Wq
            const_spec((D, D)),   # Wk
            const_spec((D, D)),   # Wv
            const_spec((D, D)),   # Wo
            const_spec((D, F)),   # W1
            const_spec((1, F)),   # b1
            const_spec((F, D)),   # W2
            const_spec((1, D)),   # b2
        ],
        out_specs=pl.BlockSpec((1, TQ, D), lambda b, qi: (b, qi, 0)),
    )

    # Advisory cost estimate so XLA schedules/overlaps neighbors correctly.
    flops = int(2 * B * (LQ + 2 * LM) * D * D      # Q/K/V projections
                + 4 * B * LQ * LM * D              # logits + P@V (all heads)
                + 2 * B * LQ * D * D               # Wo
                + 4 * B * LQ * D * F)              # FFN
    transcendentals = int(B * num_heads * LQ * (LM + 1) + 2 * B * LQ)
    bytes_accessed = int(4 * (2 * x.size + mem.size)               # f32 activations in/out
                         + 2 * (4 * D * D + 2 * D * F)             # bf16 weights
                         + 4 * (D + F))                            # f32 biases

    return pl.pallas_call(
        kernel,
        out_shape=jax.ShapeDtypeStruct((B, LQ, D), x.dtype),
        grid_spec=grid_spec,
        compiler_params=pltpu.CompilerParams(
            dimension_semantics=("parallel", "parallel"),
            vmem_limit_bytes=48 * 1024 * 1024,
        ),
        cost_estimate=pl.CostEstimate(
            flops=flops,
            transcendentals=transcendentals,
            bytes_accessed=bytes_accessed),
    )(x, mem, wq, wk, wv, wo, w1, b1, w2, b2)


def encoder2_reference(x, mem, params, *, num_heads):
    """Pure-JAX f32 reference mirroring the PyTorch forward pass."""
    B, LQ, D = x.shape
    LM = mem.shape[1]
    hd = D // num_heads
    q = x @ params["wq"]
    k = mem @ params["wk"]
    v = mem @ params["wv"]
    q = q.reshape(B, LQ, num_heads, hd).transpose(0, 2, 1, 3)
    k = k.reshape(B, LM, num_heads, hd).transpose(0, 2, 1, 3)
    v = v.reshape(B, LM, num_heads, hd).transpose(0, 2, 1, 3)
    logits = jnp.einsum("bhqd,bhkd->bhqk", q, k) / math.sqrt(hd)
    w = jax.nn.softmax(logits, axis=-1)
    o = jnp.einsum("bhqk,bhkd->bhqd", w, v).transpose(0, 2, 1, 3).reshape(B, LQ, D)
    ca = o @ params["wo"]
    y = _layernorm(x + ca)
    ff = jnp.maximum(y @ params["w1"] + params["b1"], 0.0) @ params["w2"] + params["b2"]
    return _layernorm(y + ff)


def make_params(key, d_model, ff_hidden_dim):
    """Deterministic synthetic parameters. Stored as (in, out) so kernels do x @ W."""
    ks = jax.random.split(key, 8)
    s = 1.0 / math.sqrt(d_model)
    sf = 1.0 / math.sqrt(ff_hidden_dim)
    return {
        "wq": jax.random.uniform(ks[0], (d_model, d_model), jnp.float32, -s, s),
        "wk": jax.random.uniform(ks[1], (d_model, d_model), jnp.float32, -s, s),
        "wv": jax.random.uniform(ks[2], (d_model, d_model), jnp.float32, -s, s),
        "wo": jax.random.uniform(ks[3], (d_model, d_model), jnp.float32, -s, s),
        "w1": jax.random.uniform(ks[4], (d_model, ff_hidden_dim), jnp.float32, -s, s),
        "b1": jax.random.uniform(ks[5], (1, ff_hidden_dim), jnp.float32, -s, s),
        "w2": jax.random.uniform(ks[6], (ff_hidden_dim, d_model), jnp.float32, -sf, sf),
        "b2": jax.random.uniform(ks[7], (1, d_model), jnp.float32, -sf, sf),
    }


if __name__ == "__main__":
    B, LQ, LM, D, F, H = 2, 8, 8, 32, 64, 4

    key = jax.random.PRNGKey(0)
    kx, km, kp = jax.random.split(key, 3)
    x = jax.random.normal(kx, (B, LQ, D), jnp.float32)
    mem = jax.random.normal(km, (B, LM, D), jnp.float32)
    params = make_params(kp, D, F)

    out = encoder2_layer(x, mem, params, num_heads=H)
    out = jax.block_until_ready(out)

    ref = encoder2_reference(x, mem, params, num_heads=H)
    assert out.shape == (B, LQ, D)
    # bf16 MXU operands + approx softmax reciprocal => slightly looser tolerance
    # than the previous pure-f32 kernel.
    assert jnp.allclose(out, ref, rtol=2e-2, atol=2e-2), "mismatch vs JAX reference"

    print("KERNEL_OK")
</pallas_src>

<mosaic_0001>
module attributes {stable_mosaic.version = 11 : i64} {
  func.func @_encoder2_kernel(%arg0: i32, %arg1: i32, %arg2: memref<1x8x32xf32, #tpu.memory_space<vmem>>, %arg3: memref<1x8x32xf32, #tpu.memory_space<vmem>>, %arg4: memref<32x32xbf16, #tpu.memory_space<vmem>>, %arg5: memref<32x32xbf16, #tpu.memory_space<vmem>>, %arg6: memref<32x32xbf16, #tpu.memory_space<vmem>>, %arg7: memref<32x32xbf16, #tpu.memory_space<vmem>>, %arg8: memref<32x64xbf16, #tpu.memory_space<vmem>>, %arg9: memref<1x64xf32, #tpu.memory_space<vmem>>, %arg10: memref<64x32xbf16, #tpu.memory_space<vmem>>, %arg11: memref<1x32xf32, #tpu.memory_space<vmem>>, %arg12: memref<1x8x32xf32, #tpu.memory_space<vmem>>) attributes {dimension_semantics = [#tpu.dimension_semantics<parallel>, #tpu.dimension_semantics<parallel>], iteration_bounds = array<i64: 2, 1>, scalar_prefetch = 0 : i64, scratch_operands = 0 : i64, tpu.core_type = #tpu.core_type<tc>, window_params = [{transform_indices = @transform_0, window_bounds = array<i64: 1, 8, 32>}, {transform_indices = @transform_1, window_bounds = array<i64: 1, 8, 32>}, {pipeline_mode = #tpu.pipeline_mode<synchronous>, transform_indices = @transform_2, window_bounds = array<i64: 32, 32>}, {pipeline_mode = #tpu.pipeline_mode<synchronous>, transform_indices = @transform_3, window_bounds = array<i64: 32, 32>}, {pipeline_mode = #tpu.pipeline_mode<synchronous>, transform_indices = @transform_4, window_bounds = array<i64: 32, 32>}, {pipeline_mode = #tpu.pipeline_mode<synchronous>, transform_indices = @transform_5, window_bounds = array<i64: 32, 32>}, {pipeline_mode = #tpu.pipeline_mode<synchronous>, transform_indices = @transform_6, window_bounds = array<i64: 32, 64>}, {pipeline_mode = #tpu.pipeline_mode<synchronous>, transform_indices = @transform_7, window_bounds = array<i64: 1, 64>}, {pipeline_mode = #tpu.pipeline_mode<synchronous>, transform_indices = @transform_8, window_bounds = array<i64: 64, 32>}, {pipeline_mode = #tpu.pipeline_mode<synchronous>, transform_indices = @transform_9, window_bounds = array<i64: 1, 32>}, {transform_indices = @transform_10, window_bounds = array<i64: 1, 8, 32>}]} {
    %c0 = arith.constant 0 : index
    %c0_0 = arith.constant 0 : index
    %c0_1 = arith.constant 0 : index
    %0 = vector.load %arg2[%c0, %c0_0, %c0_1] : memref<1x8x32xf32, #tpu.memory_space<vmem>>, vector<1x8x32xf32>
    %1 = vector.shape_cast %0 : vector<1x8x32xf32> to vector<8x32xf32>
    %2 = arith.truncf %1 : vector<8x32xf32> to vector<8x32xbf16>
    %c0_2 = arith.constant 0 : index
    %c0_3 = arith.constant 0 : index
    %c0_4 = arith.constant 0 : index
    %3 = vector.load %arg3[%c0_2, %c0_3, %c0_4] : memref<1x8x32xf32, #tpu.memory_space<vmem>>, vector<1x8x32xf32>
    %4 = vector.shape_cast %3 : vector<1x8x32xf32> to vector<8x32xf32>
    %5 = arith.truncf %4 : vector<8x32xf32> to vector<8x32xbf16>
    %c0_5 = arith.constant 0 : index
    %c0_6 = arith.constant 0 : index
    %6 = vector.load %arg4[%c0_5, %c0_6] : memref<32x32xbf16, #tpu.memory_space<vmem>>, vector<32x32xbf16>
    %cst = arith.constant dense<0.000000e+00> : vector<8x32xf32>
    %7 = tpu.matmul %2, %6, %cst {dimension_numbers = #tpu.dot_dimension_numbers<[1], [0], [0], [1], [0, 0, 1, 1], [], []>} : vector<8x32xbf16>, vector<32x32xbf16>, vector<8x32xf32> -> vector<8x32xf32>
    %c0_7 = arith.constant 0 : index
    %c0_8 = arith.constant 0 : index
    %8 = vector.load %arg5[%c0_7, %c0_8] : memref<32x32xbf16, #tpu.memory_space<vmem>>, vector<32x32xbf16>
    %cst_9 = arith.constant dense<0.000000e+00> : vector<8x32xf32>
    %9 = tpu.matmul %5, %8, %cst_9 {dimension_numbers = #tpu.dot_dimension_numbers<[1], [0], [0], [1], [0, 0, 1, 1], [], []>} : vector<8x32xbf16>, vector<32x32xbf16>, vector<8x32xf32> -> vector<8x32xf32>
    %c0_10 = arith.constant 0 : index
    %c0_11 = arith.constant 0 : index
    %10 = vector.load %arg6[%c0_10, %c0_11] : memref<32x32xbf16, #tpu.memory_space<vmem>>, vector<32x32xbf16>
    %cst_12 = arith.constant dense<0.000000e+00> : vector<8x32xf32>
    %11 = tpu.matmul %5, %10, %cst_12 {dimension_numbers = #tpu.dot_dimension_numbers<[1], [0], [0], [1], [0, 0, 1, 1], [], []>} : vector<8x32xbf16>, vector<32x32xbf16>, vector<8x32xf32> -> vector<8x32xf32>
    %12 = vector.extract_strided_slice %7 {offsets = [0, 0], sizes = [8, 8], strides = [1, 1]} : vector<8x32xf32> to vector<8x8xf32>
    %cst_13 = arith.constant 0.353553385 : f32
    %13 = vector.broadcast %cst_13 : f32 to vector<8x8xf32>
    %14 = arith.mulf %12, %13 : vector<8x8xf32>
    %15 = arith.truncf %14 : vector<8x8xf32> to vector<8x8xbf16>
    %16 = vector.extract_strided_slice %9 {offsets = [0, 0], sizes = [8, 8], strides = [1, 1]} : vector<8x32xf32> to vector<8x8xf32>
    %17 = arith.truncf %16 : vector<8x8xf32> to vector<8x8xbf16>
    %18 = vector.extract_strided_slice %11 {offsets = [0, 0], sizes = [8, 8], strides = [1, 1]} : vector<8x32xf32> to vector<8x8xf32>
    %19 = arith.truncf %18 : vector<8x8xf32> to vector<8x8xbf16>
    %20 = tpu.transpose %17, [1, 0] : vector<8x8xbf16> -> vector<8x8xbf16>
    %cst_14 = arith.constant dense<0.000000e+00> : vector<8x8xf32>
    %21 = tpu.matmul %15, %20, %cst_14 {dimension_numbers = #tpu.dot_dimension_numbers<[1], [0], [0], [1], [0, 0, 1, 1], [], []>} : vector<8x8xbf16>, vector<8x8xbf16>, vector<8x8xf32> -> vector<8x8xf32>
    %cst_15 = arith.constant dense<0xFF800000> : vector<8xf32>
    %22 = vector.multi_reduction <maximumf>, %21, %cst_15 [1] : vector<8x8xf32> to vector<8xf32>
    %23 = vector.shape_cast %22 : vector<8xf32> to vector<8x1xf32>
    %24 = vector.broadcast %23 : vector<8x1xf32> to vector<8x8xf32>
    %25 = arith.subf %21, %24 : vector<8x8xf32>
    %26 = math.exp %25 : vector<8x8xf32>
    %cst_16 = arith.constant dense<0.000000e+00> : vector<8xf32>
    %27 = vector.multi_reduction <add>, %26, %cst_16 [1] : vector<8x8xf32> to vector<8xf32>
    %28 = vector.shape_cast %27 : vector<8xf32> to vector<8x1xf32>
    %29 = tpu.reciprocal %28 {approx = true} : vector<8x1xf32> -> vector<8x1xf32>
    %30 = vector.broadcast %29 : vector<8x1xf32> to vector<8x8xf32>
    %31 = arith.mulf %26, %30 : vector<8x8xf32>
    %32 = arith.truncf %31 : vector<8x8xf32> to vector<8x8xbf16>
    %cst_17 = arith.constant dense<0.000000e+00> : vector<8x8xf32>
    %33 = tpu.matmul %32, %19, %cst_17 {dimension_numbers = #tpu.dot_dimension_numbers<[1], [0], [0], [1], [0, 0, 1, 1], [], []>} : vector<8x8xbf16>, vector<8x8xbf16>, vector<8x8xf32> -> vector<8x8xf32>
    %34 = arith.truncf %33 : vector<8x8xf32> to vector<8x8xbf16>
    %c0_18 = arith.constant 0 : index
    %c0_19 = arith.constant 0 : index
    %35 = vector.load %arg7[%c0_18, %c0_19] : memref<32x32xbf16, #tpu.memory_space<vmem>>, vector<8x32xbf16>
    %cst_20 = arith.constant dense<0.000000e+00> : vector<8x32xf32>
    %36 = tpu.matmul %34, %35, %cst_20 {dimension_numbers = #tpu.dot_dimension_numbers<[1], [0], [0], [1], [0, 0, 1, 1], [], []>} : vector<8x8xbf16>, vector<8x32xbf16>, vector<8x32xf32> -> vector<8x32xf32>
    %37 = arith.addf %1, %36 : vector<8x32xf32>
    %38 = vector.extract_strided_slice %7 {offsets = [0, 8], sizes = [8, 8], strides = [1, 1]} : vector<8x32xf32> to vector<8x8xf32>
    %cst_21 = arith.constant 0.353553385 : f32
    %39 = vector.broadcast %cst_21 : f32 to vector<8x8xf32>
    %40 = arith.mulf %38, %39 : vector<8x8xf32>
    %41 = arith.truncf %40 : vector<8x8xf32> to vector<8x8xbf16>
    %42 = vector.extract_strided_slice %9 {offsets = [0, 8], sizes = [8, 8], strides = [1, 1]} : vector<8x32xf32> to vector<8x8xf32>
    %43 = arith.truncf %42 : vector<8x8xf32> to vector<8x8xbf16>
    %44 = vector.extract_strided_slice %11 {offsets = [0, 8], sizes = [8, 8], strides = [1, 1]} : vector<8x32xf32> to vector<8x8xf32>
    %45 = arith.truncf %44 : vector<8x8xf32> to vector<8x8xbf16>
    %46 = tpu.transpose %43, [1, 0] : vector<8x8xbf16> -> vector<8x8xbf16>
    %cst_22 = arith.constant dense<0.000000e+00> : vector<8x8xf32>
    %47 = tpu.matmul %41, %46, %cst_22 {dimension_numbers = #tpu.dot_dimension_numbers<[1], [0], [0], [1], [0, 0, 1, 1], [], []>} : vector<8x8xbf16>, vector<8x8xbf16>, vector<8x8xf32> -> vector<8x8xf32>
    %cst_23 = arith.constant dense<0xFF800000> : vector<8xf32>
    %48 = vector.multi_reduction <maximumf>, %47, %cst_23 [1] : vector<8x8xf32> to vector<8xf32>
    %49 = vector.shape_cast %48 : vector<8xf32> to vector<8x1xf32>
    %50 = vector.broadcast %49 : vector<8x1xf32> to vector<8x8xf32>
    %51 = arith.subf %47, %50 : vector<8x8xf32>
    %52 = math.exp %51 : vector<8x8xf32>
    %cst_24 = arith.constant dense<0.000000e+00> : vector<8xf32>
    %53 = vector.multi_reduction <add>, %52, %cst_24 [1] : vector<8x8xf32> to vector<8xf32>
    %54 = vector.shape_cast %53 : vector<8xf32> to vector<8x1xf32>
    %55 = tpu.reciprocal %54 {approx = true} : vector<8x1xf32> -> vector<8x1xf32>
    %56 = vector.broadcast %55 : vector<8x1xf32> to vector<8x8xf32>
    %57 = arith.mulf %52, %56 : vector<8x8xf32>
    %58 = arith.truncf %57 : vector<8x8xf32> to vector<8x8xbf16>
    %cst_25 = arith.constant dense<0.000000e+00> : vector<8x8xf32>
    %59 = tpu.matmul %58, %45, %cst_25 {dimension_numbers = #tpu.dot_dimension_numbers<[1], [0], [0], [1], [0, 0, 1, 1], [], []>} : vector<8x8xbf16>, vector<8x8xbf16>, vector<8x8xf32> -> vector<8x8xf32>
    %60 = arith.truncf %59 : vector<8x8xf32> to vector<8x8xbf16>
    %c8 = arith.constant 8 : index
    %c0_26 = arith.constant 0 : index
    %61 = vector.load %arg7[%c8, %c0_26] : memref<32x32xbf16, #tpu.memory_space<vmem>>, vector<8x32xbf16>
    %cst_27 = arith.constant dense<0.000000e+00> : vector<8x32xf32>
    %62 = tpu.matmul %60, %61, %cst_27 {dimension_numbers = #tpu.dot_dimension_numbers<[1], [0], [0], [1], [0, 0, 1, 1], [], []>} : vector<8x8xbf16>, vector<8x32xbf16>, vector<8x32xf32> -> vector<8x32xf32>
    %63 = arith.addf %37, %62 : vector<8x32xf32>
    %64 = vector.extract_strided_slice %7 {offsets = [0, 16], sizes = [8, 8], strides = [1, 1]} : vector<8x32xf32> to vector<8x8xf32>
    %cst_28 = arith.constant 0.353553385 : f32
    %65 = vector.broadcast %cst_28 : f32 to vector<8x8xf32>
    %66 = arith.mulf %64, %65 : vector<8x8xf32>
    %67 = arith.truncf %66 : vector<8x8xf32> to vector<8x8xbf16>
    %68 = vector.extract_strided_slice %9 {offsets = [0, 16], sizes = [8, 8], strides = [1, 1]} : vector<8x32xf32> to vector<8x8xf32>
    %69 = arith.truncf %68 : vector<8x8xf32> to vector<8x8xbf16>
    %70 = vector.extract_strided_slice %11 {offsets = [0, 16], sizes = [8, 8], strides = [1, 1]} : vector<8x32xf32> to vector<8x8xf32>
    %71 = arith.truncf %70 : vector<8x8xf32> to vector<8x8xbf16>
    %72 = tpu.transpose %69, [1, 0] : vector<8x8xbf16> -> vector<8x8xbf16>
    %cst_29 = arith.constant dense<0.000000e+00> : vector<8x8xf32>
    %73 = tpu.matmul %67, %72, %cst_29 {dimension_numbers = #tpu.dot_dimension_numbers<[1], [0], [0], [1], [0, 0, 1, 1], [], []>} : vector<8x8xbf16>, vector<8x8xbf16>, vector<8x8xf32> -> vector<8x8xf32>
    %cst_30 = arith.constant dense<0xFF800000> : vector<8xf32>
    %74 = vector.multi_reduction <maximumf>, %73, %cst_30 [1] : vector<8x8xf32> to vector<8xf32>
    %75 = vector.shape_cast %74 : vector<8xf32> to vector<8x1xf32>
    %76 = vector.broadcast %75 : vector<8x1xf32> to vector<8x8xf32>
    %77 = arith.subf %73, %76 : vector<8x8xf32>
    %78 = math.exp %77 : vector<8x8xf32>
    %cst_31 = arith.constant dense<0.000000e+00> : vector<8xf32>
    %79 = vector.multi_reduction <add>, %78, %cst_31 [1] : vector<8x8xf32> to vector<8xf32>
    %80 = vector.shape_cast %79 : vector<8xf32> to vector<8x1xf32>
    %81 = tpu.reciprocal %80 {approx = true} : vector<8x1xf32> -> vector<8x1xf32>
    %82 = vector.broadcast %81 : vector<8x1xf32> to vector<8x8xf32>
    %83 = arith.mulf %78, %82 : vector<8x8xf32>
    %84 = arith.truncf %83 : vector<8x8xf32> to vector<8x8xbf16>
    %cst_32 = arith.constant dense<0.000000e+00> : vector<8x8xf32>
    %85 = tpu.matmul %84, %71, %cst_32 {dimension_numbers = #tpu.dot_dimension_numbers<[1], [0], [0], [1], [0, 0, 1, 1], [], []>} : vector<8x8xbf16>, vector<8x8xbf16>, vector<8x8xf32> -> vector<8x8xf32>
    %86 = arith.truncf %85 : vector<8x8xf32> to vector<8x8xbf16>
    %c16 = arith.constant 16 : index
    %c0_33 = arith.constant 0 : index
    %87 = vector.load %arg7[%c16, %c0_33] : memref<32x32xbf16, #tpu.memory_space<vmem>>, vector<8x32xbf16>
    %cst_34 = arith.constant dense<0.000000e+00> : vector<8x32xf32>
    %88 = tpu.matmul %86, %87, %cst_34 {dimension_numbers = #tpu.dot_dimension_numbers<[1], [0], [0], [1], [0, 0, 1, 1], [], []>} : vector<8x8xbf16>, vector<8x32xbf16>, vector<8x32xf32> -> vector<8x32xf32>
    %89 = arith.addf %63, %88 : vector<8x32xf32>
    %90 = vector.extract_strided_slice %7 {offsets = [0, 24], sizes = [8, 8], strides = [1, 1]} : vector<8x32xf32> to vector<8x8xf32>
    %cst_35 = arith.constant 0.353553385 : f32
    %91 = vector.broadcast %cst_35 : f32 to vector<8x8xf32>
    %92 = arith.mulf %90, %91 : vector<8x8xf32>
    %93 = arith.truncf %92 : vector<8x8xf32> to vector<8x8xbf16>
    %94 = vector.extract_strided_slice %9 {offsets = [0, 24], sizes = [8, 8], strides = [1, 1]} : vector<8x32xf32> to vector<8x8xf32>
    %95 = arith.truncf %94 : vector<8x8xf32> to vector<8x8xbf16>
    %96 = vector.extract_strided_slice %11 {offsets = [0, 24], sizes = [8, 8], strides = [1, 1]} : vector<8x32xf32> to vector<8x8xf32>
    %97 = arith.truncf %96 : vector<8x8xf32> to vector<8x8xbf16>
    %98 = tpu.transpose %95, [1, 0] : vector<8x8xbf16> -> vector<8x8xbf16>
    %cst_36 = arith.constant dense<0.000000e+00> : vector<8x8xf32>
    %99 = tpu.matmul %93, %98, %cst_36 {dimension_numbers = #tpu.dot_dimension_numbers<[1], [0], [0], [1], [0, 0, 1, 1], [], []>} : vector<8x8xbf16>, vector<8x8xbf16>, vector<8x8xf32> -> vector<8x8xf32>
    %cst_37 = arith.constant dense<0xFF800000> : vector<8xf32>
    %100 = vector.multi_reduction <maximumf>, %99, %cst_37 [1] : vector<8x8xf32> to vector<8xf32>
    %101 = vector.shape_cast %100 : vector<8xf32> to vector<8x1xf32>
    %102 = vector.broadcast %101 : vector<8x1xf32> to vector<8x8xf32>
    %103 = arith.subf %99, %102 : vector<8x8xf32>
    %104 = math.exp %103 : vector<8x8xf32>
    %cst_38 = arith.constant dense<0.000000e+00> : vector<8xf32>
    %105 = vector.multi_reduction <add>, %104, %cst_38 [1] : vector<8x8xf32> to vector<8xf32>
    %106 = vector.shape_cast %105 : vector<8xf32> to vector<8x1xf32>
    %107 = tpu.reciprocal %106 {approx = true} : vector<8x1xf32> -> vector<8x1xf32>
    %108 = vector.broadcast %107 : vector<8x1xf32> to vector<8x8xf32>
    %109 = arith.mulf %104, %108 : vector<8x8xf32>
    %110 = arith.truncf %109 : vector<8x8xf32> to vector<8x8xbf16>
    %cst_39 = arith.constant dense<0.000000e+00> : vector<8x8xf32>
    %111 = tpu.matmul %110, %97, %cst_39 {dimension_numbers = #tpu.dot_dimension_numbers<[1], [0], [0], [1], [0, 0, 1, 1], [], []>} : vector<8x8xbf16>, vector<8x8xbf16>, vector<8x8xf32> -> vector<8x8xf32>
    %112 = arith.truncf %111 : vector<8x8xf32> to vector<8x8xbf16>
    %c24 = arith.constant 24 : index
    %c0_40 = arith.constant 0 : index
    %113 = vector.load %arg7[%c24, %c0_40] : memref<32x32xbf16, #tpu.memory_space<vmem>>, vector<8x32xbf16>
    %cst_41 = arith.constant dense<0.000000e+00> : vector<8x32xf32>
    %114 = tpu.matmul %112, %113, %cst_41 {dimension_numbers = #tpu.dot_dimension_numbers<[1], [0], [0], [1], [0, 0, 1, 1], [], []>} : vector<8x8xbf16>, vector<8x32xbf16>, vector<8x32xf32> -> vector<8x32xf32>
    %115 = arith.addf %89, %114 : vector<8x32xf32>
    %cst_42 = arith.constant dense<0.000000e+00> : vector<8xf32>
    %116 = vector.multi_reduction <add>, %115, %cst_42 [1] : vector<8x32xf32> to vector<8xf32>
    %117 = vector.shape_cast %116 : vector<8xf32> to vector<8x1xf32>
    %cst_43 = arith.constant 3.200000e+01 : f32
    %118 = vector.broadcast %cst_43 : f32 to vector<8x1xf32>
    %119 = arith.divf %117, %118 : vector<8x1xf32>
    %120 = vector.broadcast %119 : vector<8x1xf32> to vector<8x32xf32>
    %121 = arith.subf %115, %120 : vector<8x32xf32>
    %122 = arith.mulf %121, %121 : vector<8x32xf32>
    %cst_44 = arith.constant dense<0.000000e+00> : vector<8xf32>
    %123 = vector.multi_reduction <add>, %122, %cst_44 [1] : vector<8x32xf32> to vector<8xf32>
    %124 = vector.shape_cast %123 : vector<8xf32> to vector<8x1xf32>
    %cst_45 = arith.constant 3.200000e+01 : f32
    %125 = vector.broadcast %cst_45 : f32 to vector<8x1xf32>
    %126 = arith.divf %124, %125 : vector<8x1xf32>
    %127 = vector.broadcast %119 : vector<8x1xf32> to vector<8x32xf32>
    %128 = arith.subf %115, %127 : vector<8x32xf32>
    %cst_46 = arith.constant 9.99999974E-6 : f32
    %129 = vector.broadcast %cst_46 : f32 to vector<8x1xf32>
    %130 = arith.addf %126, %129 : vector<8x1xf32>
    %131 = math.rsqrt %130 : vector<8x1xf32>
    %132 = vector.broadcast %131 : vector<8x1xf32> to vector<8x32xf32>
    %133 = arith.mulf %128, %132 : vector<8x32xf32>
    %134 = arith.truncf %133 : vector<8x32xf32> to vector<8x32xbf16>
    %c0_47 = arith.constant 0 : index
    %c0_48 = arith.constant 0 : index
    %135 = vector.load %arg8[%c0_47, %c0_48] : memref<32x64xbf16, #tpu.memory_space<vmem>>, vector<32x64xbf16>
    %cst_49 = arith.constant dense<0.000000e+00> : vector<8x64xf32>
    %136 = tpu.matmul %134, %135, %cst_49 {dimension_numbers = #tpu.dot_dimension_numbers<[1], [0], [0], [1], [0, 0, 1, 1], [], []>} : vector<8x32xbf16>, vector<32x64xbf16>, vector<8x64xf32> -> vector<8x64xf32>
    %c0_50 = arith.constant 0 : index
    %c0_51 = arith.constant 0 : index
    %137 = vector.load %arg9[%c0_50, %c0_51] : memref<1x64xf32, #tpu.memory_space<vmem>>, vector<1x64xf32>
    %138 = vector.broadcast %137 : vector<1x64xf32> to vector<8x64xf32>
    %139 = arith.addf %136, %138 : vector<8x64xf32>
    %cst_52 = arith.constant 0.000000e+00 : f32
    %140 = vector.broadcast %cst_52 : f32 to vector<8x64xf32>
    %141 = arith.maximumf %139, %140 : vector<8x64xf32>
    %142 = arith.truncf %141 : vector<8x64xf32> to vector<8x64xbf16>
    %c0_53 = arith.constant 0 : index
    %c0_54 = arith.constant 0 : index
    %143 = vector.load %arg10[%c0_53, %c0_54] : memref<64x32xbf16, #tpu.memory_space<vmem>>, vector<64x32xbf16>
    %cst_55 = arith.constant dense<0.000000e+00> : vector<8x32xf32>
    %144 = tpu.matmul %142, %143, %cst_55 {dimension_numbers = #tpu.dot_dimension_numbers<[1], [0], [0], [1], [0, 0, 1, 1], [], []>} : vector<8x64xbf16>, vector<64x32xbf16>, vector<8x32xf32> -> vector<8x32xf32>
    %c0_56 = arith.constant 0 : index
    %c0_57 = arith.constant 0 : index
    %145 = vector.load %arg11[%c0_56, %c0_57] : memref<1x32xf32, #tpu.memory_space<vmem>>, vector<1x32xf32>
    %146 = vector.broadcast %145 : vector<1x32xf32> to vector<8x32xf32>
    %147 = arith.addf %144, %146 : vector<8x32xf32>
    %148 = arith.addf %133, %147 : vector<8x32xf32>
    %cst_58 = arith.constant dense<0.000000e+00> : vector<8xf32>
    %149 = vector.multi_reduction <add>, %148, %cst_58 [1] : vector<8x32xf32> to vector<8xf32>
    %150 = vector.shape_cast %149 : vector<8xf32> to vector<8x1xf32>
    %cst_59 = arith.constant 3.200000e+01 : f32
    %151 = vector.broadcast %cst_59 : f32 to vector<8x1xf32>
    %152 = arith.divf %150, %151 : vector<8x1xf32>
    %153 = vector.broadcast %152 : vector<8x1xf32> to vector<8x32xf32>
    %154 = arith.subf %148, %153 : vector<8x32xf32>
    %155 = arith.mulf %154, %154 : vector<8x32xf32>
    %cst_60 = arith.constant dense<0.000000e+00> : vector<8xf32>
    %156 = vector.multi_reduction <add>, %155, %cst_60 [1] : vector<8x32xf32> to vector<8xf32>
    %157 = vector.shape_cast %156 : vector<8xf32> to vector<8x1xf32>
    %cst_61 = arith.constant 3.200000e+01 : f32
    %158 = vector.broadcast %cst_61 : f32 to vector<8x1xf32>
    %159 = arith.divf %157, %158 : vector<8x1xf32>
    %160 = vector.broadcast %152 : vector<8x1xf32> to vector<8x32xf32>
    %161 = arith.subf %148, %160 : vector<8x32xf32>
    %cst_62 = arith.constant 9.99999974E-6 : f32
    %162 = vector.broadcast %cst_62 : f32 to vector<8x1xf32>
    %163 = arith.addf %159, %162 : vector<8x1xf32>
    %164 = math.rsqrt %163 : vector<8x1xf32>
    %165 = vector.broadcast %164 : vector<8x1xf32> to vector<8x32xf32>
    %166 = arith.mulf %161, %165 : vector<8x32xf32>
    %c0_63 = arith.constant 0 : index
    %c0_64 = arith.constant 0 : index
    %c0_65 = arith.constant 0 : index
    %167 = vector.load %arg12[%c0_63, %c0_64, %c0_65] : memref<1x8x32xf32, #tpu.memory_space<vmem>>, vector<1x8x32xf32>
    %168 = vector.shape_cast %167 : vector<1x8x32xf32> to vector<8x32xf32>
    %169 = vector.shape_cast %166 : vector<8x32xf32> to vector<1x8x32xf32>
    tpu.vector_store %arg12[%c0_63, %c0_64, %c0_65], %169 {strides = array<i32>} : memref<1x8x32xf32, #tpu.memory_space<vmem>>, vector<1x8x32xf32>,
    return
  }
  func.func @transform_0(%arg0: i32, %arg1: i32) -> (i32, i32, i32) {
    %c0_i32 = arith.constant 0 : i32
    %c0_i32_0 = arith.constant 0 : i32
    return %arg0, %arg1, %c0_i32 : i32, i32, i32
  }
  func.func @transform_1(%arg0: i32, %arg1: i32) -> (i32, i32, i32) {
    %c0_i32 = arith.constant 0 : i32
    %c0_i32_0 = arith.constant 0 : i32
    %c0_i32_1 = arith.constant 0 : i32
    return %arg0, %c0_i32, %c0_i32_0 : i32, i32, i32
  }
  func.func @transform_2(%arg0: i32, %arg1: i32) -> (i32, i32) {
    %c0_i32 = arith.constant 0 : i32
    %c0_i32_0 = arith.constant 0 : i32
    %c0_i32_1 = arith.constant 0 : i32
    return %c0_i32, %c0_i32_0 : i32, i32
  }
  func.func @transform_3(%arg0: i32, %arg1: i32) -> (i32, i32) {
    %c0_i32 = arith.constant 0 : i32
    %c0_i32_0 = arith.constant 0 : i32
    %c0_i32_1 = arith.constant 0 : i32
    return %c0_i32, %c0_i32_0 : i32, i32
  }
  func.func @transform_4(%arg0: i32, %arg1: i32) -> (i32, i32) {
    %c0_i32 = arith.constant 0 : i32
    %c0_i32_0 = arith.constant 0 : i32
    %c0_i32_1 = arith.constant 0 : i32
    return %c0_i32, %c0_i32_0 : i32, i32
  }
  func.func @transform_5(%arg0: i32, %arg1: i32) -> (i32, i32) {
    %c0_i32 = arith.constant 0 : i32
    %c0_i32_0 = arith.constant 0 : i32
    %c0_i32_1 = arith.constant 0 : i32
    return %c0_i32, %c0_i32_0 : i32, i32
  }
  func.func @transform_6(%arg0: i32, %arg1: i32) -> (i32, i32) {
    %c0_i32 = arith.constant 0 : i32
    %c0_i32_0 = arith.constant 0 : i32
    %c0_i32_1 = arith.constant 0 : i32
    return %c0_i32, %c0_i32_0 : i32, i32
  }
  func.func @transform_7(%arg0: i32, %arg1: i32) -> (i32, i32) {
    %c0_i32 = arith.constant 0 : i32
    %c0_i32_0 = arith.constant 0 : i32
    %c0_i32_1 = arith.constant 0 : i32
    return %c0_i32, %c0_i32_0 : i32, i32
  }
  func.func @transform_8(%arg0: i32, %arg1: i32) -> (i32, i32) {
    %c0_i32 = arith.constant 0 : i32
    %c0_i32_0 = arith.constant 0 : i32
    %c0_i32_1 = arith.constant 0 : i32
    return %c0_i32, %c0_i32_0 : i32, i32
  }
  func.func @transform_9(%arg0: i32, %arg1: i32) -> (i32, i32) {
    %c0_i32 = arith.constant 0 : i32
    %c0_i32_0 = arith.constant 0 : i32
    %c0_i32_1 = arith.constant 0 : i32
    return %c0_i32, %c0_i32_0 : i32, i32
  }
  func.func @transform_10(%arg0: i32, %arg1: i32) -> (i32, i32, i32) {
    %c0_i32 = arith.constant 0 : i32
    %c0_i32_0 = arith.constant 0 : i32
    return %arg0, %arg1, %c0_i32 : i32, i32, i32
  }
}

</mosaic_0001>

<bundles_post_ra>
// kernel: tpu_custom_call.1
= control target key start
LH: loop header
LB: loop body
LE: loop exit
PB: predicated region body
PF: predicated region fallthrough
CT: control target
= control target key end

     0   :  { %s2529_s0 = inlined_call_operand.vmem [shape: f32[2,8,32], index: 0, kind: input, shape index: {}]   ;;  %s2530_s1 = inlined_call_operand.vmem [shape: f32[2,8,32], index: 1, kind: input, shape index: {}]   ;;  %s2531_s2 = inlined_call_operand.vmem [shape: bf16[32,32], index: 2, kind: input, shape index: {}]   ;;  %s2532_s3 = inlined_call_operand.hbm [shape: bf16[32,32], index: 3, kind: input, shape index: {}]   ;;  %s2533_s4 = inlined_call_operand.hbm [shape: bf16[32,32], index: 4, kind: input, shape index: {}]   ;;  %s2534_s5 = inlined_call_operand.hbm [shape: bf16[32,32], index: 5, kind: input, shape index: {}]   ;;  %s2535_s6 = inlined_call_operand.hbm [shape: bf16[32,64], index: 6, kind: input, shape index: {}]   ;;  %s2536_s7 = inlined_call_operand.vmem [shape: f32[1,64], index: 7, kind: input, shape index: {}]   ;;  %s2537_s8 = inlined_call_operand.vmem [shape: bf16[64,32], index: 8, kind: input, shape index: {}]   ;;  %s2538_s9 = inlined_call_operand.vmem [shape: f32[1,32], index: 9, kind: input, shape index: {}]   ;;  %s2539_s10 = inlined_call_operand.hbm [shape: f32[2,8,32], index: 10, kind: output, shape index: {}]  }
   0x1   :  { %2542 = sst [smem:[#allocation18_spill]] %s2533_s4 }
   0x2   :  { %15 = vsyncpa [#allocation3], 0 }
   0x3   :  { %16 = vsyncpa [#allocation6], 0 }
   0x4   :  { %17 = vsyncpa [#allocation9], 0 }
   0x5   :  { %18 = vsyncpa [#allocation4], 0 }
   0x6   :  { %20 = vsyncpa [#allocation4 + $0x1], 0  ;;  %s2199_s13 = smov 0   ;;  %s2201_s14 = smov 0  }
   0x7   :  { %s2203_s15 = smov 0   ;;  %s2205_s16 = smov 0  }
   0x8   :  { %s2207_s17 = smov 0   ;;  %s2209_s18 = smov 0  }
   0x9 LB: > { %2543 = sst [smem:[#allocation15_spill]] %s2126_s17  ;;  %s1595_s19 = sadd.s32 4294967295, %s2130_s18   ;;  %s2130_s18 = sphi %s2209_s18, %s26_s18   ;;  %s2126_s17 = sphi %s2207_s17, %s2554_s17   ;;  %s2122_s16 = sphi %s2205_s16, %s2553_s16   ;;  %s2118_s15 = sphi %s2203_s15, %s2557_s15   ;;  %s2114_s14 = sphi %s2201_s14, %s2556_s14   ;;  %s2110_s13 = sphi %s2199_s13, %s2555_s13  }
   0xa   : > { %s1596_s20 = sadd.s32 4294967294, %s2130_s18   ;;  %s38_s21 = sadd.s32 1, %s2126_s17 }
   0xb   : > { %s269_s22 = sadd.s32 1, %s2118_s15  ;;  %p40_p0 = scmp.ge.s32.totalorder %s38_s21, 2 }
   0xc   : > { %p279_p1 = scmp.ne.s32.totalorder %s2118_s15, %s2114_s14  ;;  %p280_p2 = scmp.eq.s32.totalorder %s1595_s19, 1 }
   0xd   : > { %p285_p3 = scmp.ne.s32.totalorder %s2114_s14, %s2110_s13  ;;  %s2559_s21 = smov (%p40_p0, %s38_s21), 0 }
   0xe   : > { %2544 = sst [smem:[#allocation16_spill]] %s2559_s21  ;;  %p2239_p4 = por %p280_p2, %p279_p1 }
   0xf   : > { %p286_p5 = scmp.eq.s32.totalorder %s1596_s20, 1  ;;  %s264_s24 = ssub.s32 %s2126_s17, %s2559_s21 }
  0x10   : > { %p1597_p6 = scmp.ge.s32.totalorder %s2130_s18, 1  ;;  %p267_p7 = scmp.eq.s32.totalorder %s264_s24, 0 }
  0x11   : > { %p2246_p8 = por %p286_p5, %p285_p3  ;;  %p293_p9 = scmp.lt.s32.totalorder %s2130_s18, 3 }
  0x12   : > { %s2252_s26 = scalar_select %p267_p7, %s2118_s15, %s269_s22  }
  0x13   : > { %p2254_p10 = pnand %p1597_p6, %p293_p9  ;;  %p2258_p11 = scmp.eq.s32.totalorder %s1595_s19, 0 }
  0x14   : > { %2547 = sst [smem:[#allocation17_spill]] %s2252_s26  ;;  %s2132_s29 = smov [#allocation5]  }
  0x15   : > { %p1821_p12 = pneg %p2254_p10  ;;  %s321_s30 = sshll.u32 %s2132_s29, 4  ;;  %s322_s30 = int_to_ptr.vmem [resolvable:$true] %s321_s30 }
  0x16   : > { %s2133_s12 = smov [#allocation2]   ;;  %s1949_s19 = scalar_lea.vmem %s322_s30, 256 }
  0x17   : > { %p2266_p13 = pnand %p2258_p11, %p1821_p12  ;;  %s308_s20 = sshll.u32 %s2133_s12, 4  ;;  %s309_s20 = int_to_ptr.vmem [resolvable:$true] %s308_s20 }
  0x18   : > { %p1950_p1 = scmp.ne.s32.totalorder %s322_s30, %s1949_s19  ;;  %p1957_p5 = scmp.lt.s32.totalorder %s322_s30, %s322_s30 }
  0x19   : > { %p1940_p0 = pneg %p2266_p13  ;;  %p1958_p6 = scmp.lt.s32.totalorder %s1949_s19, %s1949_s19 }
  0x1b   : > { %p1952_p2 = pnand %p1950_p1, %p1940_p0  ;;  %p1959_p7 = por %p1958_p6, %p1957_p5 }
  0x1d   : > { %p1953_p3 = pneg %p1952_p2 }
  0x1f   : > { %p1960_p9 = pnand %p1959_p7, %p1953_p3 }
  0x21   : > { %1963 = shalt.err (!%p1960_p9)
}
  0x22   : > { %s2134_s22 = smov 64   ;;  %s2135_s24 = smov 4  }
  0x23   : > { %s2551_s4 = sld [smem:[#allocation18_spill]]  ;;  %s1975_s21 = scalar_lea.vmem %s309_s20, 256 }
  0x24   : > { %p1976_p12 = scmp.ne.s32.totalorder %s309_s20, %s1975_s21  ;;  %p1983_p3 = scmp.lt.s32.totalorder %s309_s20, %s309_s20 }
  0x25   : > { %p1984_p5 = scmp.lt.s32.totalorder %s1975_s21, %s1975_s21 }
  0x26   : > { %p1978_p1 = pnand %p1976_p12, %p1940_p0 }
  0x27   : > { %p1985_p6 = por %p1984_p5, %p1983_p3 }
  0x28   : > { %p1979_p2 = pneg %p1978_p1 }
  0x29   : > { %1827 = dma.hbm_to_vmem [thread:$0]  (!%p2266_p13), %s2551_s4, 256, %s322_s30, [#allocation6], %s2134_s22, %s2134_s22, %s2135_s24  }
  0x2a   : > { %p1986_p7 = pnand %p1985_p6, %p1979_p2 }
  0x2c   : > { %1989 = shalt.err (!%p1986_p7)
}
  0x2d   : > { %1824 = dma.hbm_to_vmem [thread:$0]  (!%p2266_p13), %s2532_s3, 256, %s309_s20, [#allocation3], %s2134_s22, %s2134_s22, %s2135_s24  }
  0x2e   : > { %s2136_s30 = smov [#allocation7]   ;;  %s2137_s4 = smov [#allocation8]  }
  0x2f   : > { %s334_s12 = sshll.u32 %s2136_s30, 4  ;;  %s347_s17 = sshll.u32 %s2137_s4, 4  ;;  %s335_s12 = int_to_ptr.vmem [resolvable:$true] %s334_s12  ;;  %s348_s17 = int_to_ptr.vmem [resolvable:$true] %s347_s17 }
  0x30   : > { %s2001_s26 = scalar_lea.vmem %s335_s12, 256  ;;  %p2009_p2 = scmp.lt.s32.totalorder %s335_s12, %s335_s12 }
  0x31   : > { %p2002_p9 = scmp.ne.s32.totalorder %s335_s12, %s2001_s26  ;;  %p2010_p3 = scmp.lt.s32.totalorder %s2001_s26, %s2001_s26 }
  0x33   : > { %p2004_p12 = pnand %p2002_p9, %p1940_p0  ;;  %p2011_p5 = por %p2010_p3, %p2009_p2 }
  0x35   : > { %p2005_p1 = pneg %p2004_p12 }
  0x37   : > { %p2012_p6 = pnand %p2011_p5, %p2005_p1 }
  0x39   : > { %2015 = shalt.err (!%p2012_p6)
}
  0x3a   : > { %1830 = dma.hbm_to_vmem [thread:$0]  (!%p2266_p13), %s2534_s5, 256, %s335_s12, [#allocation6], %s2134_s22, %s2134_s22, %s2135_s24  }
  0x3b   : > { %s2027_s4 = scalar_lea.vmem %s348_s17, 256  ;;  %p2035_p2 = scmp.lt.s32.totalorder %s348_s17, %s348_s17 }
  0x3c   : > { %p2028_p7 = scmp.ne.s32.totalorder %s348_s17, %s2027_s4  ;;  %p2036_p1 = scmp.lt.s32.totalorder %s2027_s4, %s2027_s4 }
  0x3e   : > { %p2030_p9 = pnand %p2028_p7, %p1940_p0  ;;  %p2037_p3 = por %p2036_p1, %p2035_p2 }
  0x40   : > { %p2031_p12 = pneg %p2030_p9 }
  0x42   : > { %p2038_p5 = pnand %p2037_p3, %p2031_p12 }
  0x44   : > { %2041 = shalt.err (!%p2038_p5)
}
  0x45   : > { %1833 = dma.hbm_to_vmem [thread:$0]  (!%p2266_p13), %s2535_s6, 256, %s348_s17, [#allocation9], %s2134_s22, %s2134_s22, %s2135_s24  }
  0x46   : > { %389 = sbr.rel (%p2254_p10) target bundleno = 3762 (0xeb2), region = 60 }
  0x4b   : > { %2093 = dma.done.wait (%p2258_p11), [#allocation3], 256  }
  0x4c   : > { %2095 = vsyncadd (%p2258_p11), [#allocation3], 4294967040 }
  0x4d   : > { %2097 = dma.done.wait (%p2258_p11), [#allocation6], 512  }
  0x4e   : > { %2099 = vsyncadd (%p2258_p11), [#allocation6], 4294966784 }
  0x4f   : > { %2101 = dma.done.wait (%p2258_p11), [#allocation9], 256  }
  0x50   : > { %2103 = vsyncadd (%p2258_p11), [#allocation9], 4294967040  ;;  %p445_p10 = scmp.lt.s32.totalorder %s2122_s16, 1  ;;  %v2138_v0 = vmov 0.0   ;;  %vm2139_vm0 = vmmov 0   ;;  %v1906_v1 = vld [vmem:[%s2531_s2 + $0x8] sm:$0xff]  }
  0x51   : > { %1687 = vmatprep.subr.bf16.mxu1 %v2138_v0  ;;  %1691 = vmatprep.mubr.msk.bf16.mxu1 %vm2139_vm0, %v2138_v0  ;;  %v1907_v2 = vld [vmem:[%s2531_s2] sm:$0xff]   ;;  %vm477_vm1 = vcmask 261120   ;;  %v1908_v4 = vld [vmem:[#allocation2 + $0x8] sm:$0xff]   ;;  %vm640_vm2 = vcmask 64512   ;;  %s2140_s26 = smov 120   ;;  %v1910_v21 = vld [vmem:[#allocation5 + $0x8] sm:$0xff]  }
  0x52   : > { %s446_s17 = scalar_select %p445_p10, %s2122_s16, 1  ;;  %1703 = vmatprep.subr.bf16.mxu0 %v2138_v0  ;;  %1707 = vmatprep.mubr.msk.bf16.mxu0 %vm2139_vm0, %v2138_v0  ;;  %v1909_v6 = vld [vmem:[#allocation2] sm:$0xff]   ;;  %v1911_v22 = vld [vmem:[#allocation5] sm:$0xff]   ;;  %vm702_vm3 = vcmask 1043456   ;;  %vm1397_vm4 = vcmask 523264  }
  0x53   : > { %1688 = vmatpush3.bf16.msra.mxu1 %v1906_v1  ;;  %1704 = vmatpush3.bf16.msra.mxu0 %v1910_v21  ;;  %v747_v46 = vld [vmem:[#allocation7] sm:$0xf]  ;;  %s2141_s19 = smov 112   ;;  %s2143_s21 = smov [#allocation10]  }
  0x54   : > { %s1609_s27 = sshll.u32 %s446_s17, 3  ;;  %1689 = vmatprep.subr.bf16.mxu1 %v2138_v0  ;;  %1705 = vmatprep.subr.bf16.mxu0 %v2138_v0  ;;  %v752_v47 = vsel %vm702_vm3, %v747_v46, 0  ;;  %s2142_s17 = smov 104  }
  0x55   : > { %s451_s22 = scalar_lea.vmem %s2529_s0, %s1609_s27  ;;  %s455_s4 = scalar_lea.vmem %s2530_s1, %s1609_s27 }
  0x56   : > { %v2347_v3 = vld [vmem:[%s451_s22] sm:$0xff]  ;;  %s1643_s27 = sshll.u32 %s2122_s16, 7  ;;  %s2046_s20 = sshll.u32 %s2143_s21, 4  ;;  %s2047_s20 = int_to_ptr.vmem [resolvable:$false] %s2046_s20 }
  0x57   : > { %v458_v5 = vpack.c.bf16 %v2347_v3, %v2347_v3  ;;  %1690 = vmatpush3.bf16.msra.mxu1 %v1907_v2  ;;  %v459_v7 = vld [vmem:[%s455_s4] sm:$0xff]  ;;  %1706 = vmatpush3.bf16.msra.mxu0 %v1911_v22  ;;  %s1469_s29 = scalar_lea.hbm %s2539_s10, %s1643_s27  ;;  %s2048_s16 = scalar_lea.vmem %s2047_s20, 256 }
  0x58   : > { %1695 = vmatprep.subr.bf16.mxu1 %v2138_v0  ;;  %v460_v8 = vpack.c.bf16 %v459_v7, %v459_v7  ;;  %1717 = vmatprep.subr.bf16.mxu0 %v2138_v0  ;;  %v909_v7 = vld [vmem:[#allocation7 + $0x4] sm:$0xf] }
  0x5a   : > { %1692 = vmatmul.mubr.msk.bf16.vlgmr.msra.gmra.mxu1 %vm477_vm1, %v458_v5  ;;  %1708 = vmatmul.mubr.msk.bf16.vlgmr.msra.gmra.mxu0 %vm477_vm1, %v460_v8 }
  0x5b   : > { %1696 = vmatpush3.bf16.msra.mxu1 %v1908_v4  ;;  %1699 = vmatprep.mubr.msk.bf16.mxu1 %vm2139_vm0, %v2138_v0 }
  0x5c   : > { %1697 = vmatprep.subr.bf16.mxu1 %v2138_v0  ;;  %1719 = vmatprep.mubr.msk.bf16.mxu0 %vm2139_vm0, %v2138_v0 }
  0x5f   : > { %1698 = vmatpush3.bf16.msra.mxu1 %v1909_v6 }
  0x60   : > { %1711 = vmatprep.subr.bf16.mxu1 %v2138_v0 }
  0x62   : > { %1700 = vmatmul.mubr.msk.bf16.vlgmr.msra.gmra.mxu1 %vm477_vm1, %v460_v8  ;;  %v914_v8 = vsel %vm702_vm3, %v909_v7, 0 }
  0x63   : > { %1713 = vmatprep.mubr.msk.bf16.mxu1 %vm2139_vm0, %v2138_v0 }
 0x11a   : > { %v515_v9 = vpop.f32.mrf.mxu1  ;;  %v630_v33 = vpop.f32.mrf.mxu0 }
 0x11b   : > { %v636_v14 = vmul.f32 0.35355338, %v515_v9  ;;  %v2386_v34 = vpack.c.bf16 %v630_v33, %v630_v33 }
 0x11c   : > { %v1693_v10 = vpop.f32.mrf.mxu1  ;;  %v1709_v35 = vpop.f32.mrf.mxu0 }
 0x11d   : > { %v2370_v19 = vpack.c.bf16 %v636_v14, %v636_v14  ;;  %v704_v36 = vsel %vm702_vm3, %v2386_v34, 0 }
 0x11e   : > { %v518_v11 = vpop.f32.mrf.mxu1  ;;  %v633_v37 = vpop.f32.mrf.mxu0  ;;  %1718 = vmatpush3.bf16.msra.mxu0 %v704_v36 }
 0x11f   : > { %1729 = vmatprep.subr.bf16.mxu0 %v2138_v0 }
 0x120   : > { %v1694_v12 = vpop.f32.mrf.mxu1  ;;  %v1710_v38 = vpop.f32.mrf.mxu0 }
 0x122   : > { %v574_v13 = vpop.f32.mrf.mxu1 }
 0x123   : > { %v2364_v15 = vpack.c.bf16 %v574_v13, %v574_v13 }
 0x124   : > { %v1701_v16 = vpop.f32.mrf.mxu1 }
 0x125   : > { %799 = vrot.lane.b32.xlu1 %v2364_v15, %s2140_s26  ;;  %v645_v17 = vsel %vm640_vm2, %v2364_v15, 0 }
 0x126   : > { %v577_v18 = vpop.f32.mrf.mxu1  ;;  %1712 = vmatpush3.bf16.xpose.msra.mxu1 %v645_v17 }
 0x127   : > { %1723 = vmatprep.subr.bf16.mxu1 %v2138_v0 }
 0x128   : > { %v1702_v20 = vpop.f32.mrf.mxu1 }
 0x129   : > { %796 = vrot.lane.b32.xlu1 %v2370_v19, %s2140_s26 }
 0x12d   : > { %1714 = vmatmul.mubr.msk.bf16.vlgmr.msra.gmra.mxu1 %vm640_vm2, %v2370_v19 }
 0x12e   : > { %1725 = vmatprep.mubr.msk.bf16.mxu1 %vm2139_vm0, %v2138_v0  ;;  %1724 = vmatpush3.bf16.msra.mxu1 %v752_v47 }
 0x12f   : > { %1735 = vmatprep.subr.bf16.mxu1 %v2138_v0 }
 0x197   : > { %v800_v42 = vpop.permute.xlu1 %799 }
 0x198   : > { %v805_v44 = vsel %vm640_vm2, %v800_v42, 0 }
 0x19b   : > { %v797_v45 = vpop.permute.xlu1 %796 }
 0x1ed   : > { %v681_v23 = vpop.f32.mrf.mxu1 }
 0x1ee   : > { %v687_v24 = vsel %vm640_vm2, %v681_v23, -inf }
 0x1ef   : > { %688 = vmax.xlane.f32.xlu0 %v687_v24  ;;  %v1715_v25 = vpop.f32.mrf.mxu1 }
 0x1f1   : > { %v684_v26 = vpop.f32.mrf.mxu1 }
 0x1f3   : > { %v1716_v27 = vpop.f32.mrf.mxu1 }
 0x278   : > { %v689_v28 = vpop.xlane.xlu0 %688 }
 0x279   : > { %v690_v29 = vsub.f32 %v681_v23, %v689_v28 }
 0x27b   : > { %v691_v30 = vmul.f32 1.442695, %v690_v29 }
 0x27d   : > { %1918 = vpow2.f32 %v691_v30 }
 0x28a   : > { %v1919_v31 = vpop.eup %1918 }
 0x28b   : > { %v693_v32 = vsel %vm640_vm2, %v1919_v31, 0.0 }
 0x28c   : > { %694 = vadd.xlane.f32.xlu0 %v693_v32 }
 0x315   : > { %v695_v39 = vpop.xlane.xlu0 %694 }
 0x316   : > { %1920 = vrcp.f32 %v695_v39 }
 0x323   : > { %v1921_v40 = vpop.eup %1920 }
 0x324   : > { %v697_v41 = vmul.f32 %v1921_v40, %v1919_v31 }
 0x326   : > { %v698_v43 = vpack.c.bf16 %v697_v41, %v697_v41 }
 0x328   : > { %1720 = vmatmul.mubr.msk.bf16.vlgmr.msra.gmra.mxu0 %vm640_vm2, %v698_v43 }
 0x329   : > { %1730 = vmatpush3.bf16.xpose.msra.mxu0 %v805_v44  ;;  %1731 = vmatprep.mubr.msk.bf16.mxu0 %vm2139_vm0, %v2138_v0 }
 0x32a   : > { %1741 = vmatprep.subr.bf16.mxu0 %v2138_v0 }
 0x330   : > { %1732 = vmatmul.mubr.msk.bf16.vlgmr.msra.gmra.mxu0 %vm640_vm2, %v797_v45 }
 0x331   : > { %1743 = vmatprep.mubr.msk.bf16.mxu0 %vm2139_vm0, %v2138_v0  ;;  %1742 = vmatpush3.bf16.msra.mxu0 %v914_v8 }
 0x332   : > { %1753 = vmatprep.subr.bf16.mxu0 %v2138_v0 }
 0x3e8   : > { %v740_v48 = vpop.f32.mrf.mxu0 }
 0x3e9   : > { %v746_v49 = vpack.c.bf16 %v740_v48, %v740_v48 }
 0x3ea   : > { %v1721_v50 = vpop.f32.mrf.mxu0 }
 0x3eb   : > { %1726 = vmatmul.mubr.msk.bf16.vlgmr.msra.gmra.mxu1 %vm640_vm2, %v746_v49 }
 0x3ec   : > { %v743_v51 = vpop.f32.mrf.mxu0  ;;  %1737 = vmatprep.mubr.msk.bf16.mxu1 %vm2139_vm0, %v2138_v0 }
 0x3ee   : > { %v1722_v52 = vpop.f32.mrf.mxu0 }
 0x3f0   : > { %v841_v53 = vpop.f32.mrf.mxu0 }
 0x3f1   : > { %v847_v54 = vsel %vm640_vm2, %v841_v53, -inf }
 0x3f2   : > { %848 = vmax.xlane.f32.xlu0 %v847_v54  ;;  %v1733_v55 = vpop.f32.mrf.mxu0 }
 0x3f4   : > { %v844_v56 = vpop.f32.mrf.mxu0 }
 0x3f6   : > { %v1734_v57 = vpop.f32.mrf.mxu0 }
 0x408   : > { %860 = vrot.lane.b32.xlu0 %v2386_v34, %s2140_s26 }
 0x40c   : > { %959 = vrot.lane.b32.xlu0 %v2364_v15, %s2141_s19 }
 0x410   : > { %957 = vrot.lane.b32.xlu0 %v2370_v19, %s2141_s19 }
 0x47b   : > { %v849_v58 = vpop.xlane.xlu0 %848 }
 0x47c   : > { %v850_v59 = vsub.f32 %v841_v53, %v849_v58 }
 0x47e   : > { %v851_v60 = vmul.f32 1.442695, %v850_v59 }
 0x47f   : > { %v861_v61 = vpop.permute.xlu0 %860 }
 0x480   : > { %1922 = vpow2.f32 %v851_v60  ;;  %v866_v62 = vsel %vm702_vm3, %v861_v61, 0 }
 0x481   : > { %1736 = vmatpush3.bf16.msra.mxu1 %v866_v62 }
 0x482   : > { %1747 = vmatprep.subr.bf16.mxu1 %v2138_v0 }
 0x483   : > { %v960_v12 = vpop.permute.xlu0 %959 }
 0x484   : > { %v965_v14 = vsel %vm640_vm2, %v960_v12, 0 }
 0x487   : > { %v958_v16 = vpop.permute.xlu0 %957 }
 0x48d   : > { %v1923_v63 = vpop.eup %1922 }
 0x48e   : > { %v853_v1 = vsel %vm640_vm2, %v1923_v63, 0.0 }
 0x48f   : > { %854 = vadd.xlane.f32.xlu1 %v853_v1 }
 0x4a0   : > { %1019 = vrot.lane.b32.xlu1 %v2386_v34, %s2141_s19  ;;  %s442_s19 = sand.u32 1, %s2114_s14  }
 0x4a1   : > { %s1457_s30 = scalar_lea.sflag [#allocation4], %s442_s19 }
 0x4ab   : > { %v788_v2 = vpop.f32.mrf.mxu1 }
 0x4ac   : > { %v794_v36 = vadd.f32 %v788_v2, %v2347_v3 }
 0x4ad   : > { %v1727_v4 = vpop.f32.mrf.mxu1 }
 0x4ae   : > { %v1227_v4 = vld [vmem:[#allocation7 + $0xc] sm:$0xf] }
 0x4af   : > { %v791_v5 = vpop.f32.mrf.mxu1 }
 0x4b1   : > { %v1728_v6 = vpop.f32.mrf.mxu1 }
 0x4b2   : > { %v1232_v6 = vsel %vm702_vm3, %v1227_v4, 0 }
 0x518   : > { %v855_v9 = vpop.xlane.xlu1 %854 }
 0x519   : > { %1924 = vrcp.f32 %v855_v9 }
 0x51c   : > { %v1020_v17 = vpop.permute.xlu1 %1019 }
 0x51d   : > { %v1025_v22 = vsel %vm702_vm3, %v1020_v17, 0 }
 0x526   : > { %v1925_v10 = vpop.eup %1924 }
 0x527   : > { %v857_v11 = vmul.f32 %v1925_v10, %v1923_v63 }
 0x529   : > { %v858_v13 = vpack.c.bf16 %v857_v11, %v857_v11 }
 0x52b   : > { %1738 = vmatmul.mubr.msk.bf16.vlgmr.msra.gmra.mxu1 %vm640_vm2, %v858_v13 }
 0x52c   : > { %1748 = vmatpush3.bf16.xpose.msra.mxu1 %v965_v14  ;;  %1749 = vmatprep.mubr.msk.bf16.mxu1 %vm2139_vm0, %v2138_v0 }
 0x52d   : > { %1759 = vmatprep.subr.bf16.mxu1 %v2138_v0 }
 0x533   : > { %1750 = vmatmul.mubr.msk.bf16.vlgmr.msra.gmra.mxu1 %vm640_vm2, %v958_v16 }
 0x534   : > { %1761 = vmatprep.mubr.msk.bf16.mxu1 %vm2139_vm0, %v2138_v0 }
 0x5eb   : > { %v902_v18 = vpop.f32.mrf.mxu1 }
 0x5ec   : > { %v908_v20 = vpack.c.bf16 %v902_v18, %v902_v18 }
 0x5ed   : > { %v1739_v21 = vpop.f32.mrf.mxu1 }
 0x5ee   : > { %1744 = vmatmul.mubr.msk.bf16.vlgmr.msra.gmra.mxu0 %vm640_vm2, %v908_v20 }
 0x5ef   : > { %1754 = vmatpush3.bf16.msra.mxu0 %v1025_v22  ;;  %v905_v23 = vpop.f32.mrf.mxu1  ;;  %1755 = vmatprep.mubr.msk.bf16.mxu0 %vm2139_vm0, %v2138_v0 }
 0x5f0   : > { %1765 = vmatprep.subr.bf16.mxu0 %v2138_v0 }
 0x5f1   : > { %v1740_v24 = vpop.f32.mrf.mxu1 }
 0x5f3   : > { %v1001_v25 = vpop.f32.mrf.mxu1 }
 0x5f4   : > { %v1007_v26 = vsel %vm640_vm2, %v1001_v25, -inf }
 0x5f5   : > { %1008 = vmax.xlane.f32.xlu0 %v1007_v26  ;;  %v1751_v27 = vpop.f32.mrf.mxu1 }
 0x5f7   : > { %v1004_v28 = vpop.f32.mrf.mxu1 }
 0x5f9   : > { %v1752_v29 = vpop.f32.mrf.mxu1 }
 0x67e   : > { %v1009_v30 = vpop.xlane.xlu0 %1008 }
 0x67f   : > { %v1010_v31 = vsub.f32 %v1001_v25, %v1009_v30 }
 0x681   : > { %v1011_v32 = vmul.f32 1.442695, %v1010_v31  ;;  %v1912_v31 = vld [vmem:[#allocation8 + $0x8] sm:$0xff]  }
 0x683   : > { %1926 = vpow2.f32 %v1011_v32  ;;  %v1913_v32 = vld [vmem:[#allocation8] sm:$0xff]  }
 0x690   : > { %v1927_v33 = vpop.eup %1926 }
 0x691   : > { %v1013_v35 = vsel %vm640_vm2, %v1927_v33, 0.0 }
 0x692   : > { %1014 = vadd.xlane.f32.xlu1 %v1013_v35  ;;  %v1915_v35 = vld [vmem:[%s2537_s8 + $0x10] sm:$0xff]  }
 0x6a3   : > { %1118 = vrot.lane.b32.xlu1 %v2364_v15, %s2142_s17  ;;  %v1068_v15 = vld [vmem:[#allocation7 + $0x8] sm:$0xf] }
 0x6a7   : > { %1116 = vrot.lane.b32.xlu1 %v2370_v19, %s2142_s17  ;;  %v1073_v19 = vsel %vm702_vm3, %v1068_v15, 0 }
 0x6a8   : > { %1760 = vmatpush3.bf16.msra.mxu1 %v1073_v19 }
 0x6a9   : > { %1771 = vmatprep.subr.bf16.mxu1 %v2138_v0 }
 0x6ae   : > { %v950_v37 = vpop.f32.mrf.mxu0 }
 0x6af   : > { %v956_v38 = vadd.f32 %v950_v37, %v794_v36 }
 0x6b0   : > { %v1745_v39 = vpop.f32.mrf.mxu0 }
 0x6b2   : > { %v953_v40 = vpop.f32.mrf.mxu0 }
 0x6b4   : > { %v1746_v41 = vpop.f32.mrf.mxu0 }
 0x71b   : > { %v1015_v42 = vpop.xlane.xlu1 %1014 }
 0x71c   : > { %1928 = vrcp.f32 %v1015_v42  ;;  %v1916_v42 = vld [vmem:[%s2537_s8 + $0x8] sm:$0xff]  }
 0x71f   : > { %v1119_v45 = vpop.permute.xlu1 %1118 }
 0x720   : > { %v1124_v47 = vsel %vm640_vm2, %v1119_v45, 0 }
 0x723   : > { %v1117_v3 = vpop.permute.xlu1 %1116 }
 0x729   : > { %v1929_v43 = vpop.eup %1928 }
 0x72a   : > { %v1017_v44 = vmul.f32 %v1929_v43, %v1927_v33  ;;  %v1914_v33 = vld [vmem:[%s2537_s8 + $0x18] sm:$0xff]   ;;  %v1917_v43 = vld [vmem:[%s2537_s8] sm:$0xff]  }
 0x72c   : > { %v1018_v46 = vpack.c.bf16 %v1017_v44, %v1017_v44  ;;  %v1632_v44 = vld [vmem:[%s2536_s7] ss:$0 sm:$0xff] }
 0x72e   : > { %1756 = vmatmul.mubr.msk.bf16.vlgmr.msra.gmra.mxu0 %vm640_vm2, %v1018_v46 }
 0x72f   : > { %1766 = vmatpush3.bf16.xpose.msra.mxu0 %v1124_v47  ;;  %1767 = vmatprep.mubr.msk.bf16.mxu0 %vm2139_vm0, %v2138_v0 }
 0x730   : > { %1777 = vmatprep.subr.bf16.mxu0 %v2138_v0 }
 0x736   : > { %1768 = vmatmul.mubr.msk.bf16.vlgmr.msra.gmra.mxu0 %vm640_vm2, %v1117_v3 }
 0x737   : > { %1779 = vmatprep.mubr.msk.bf16.mxu0 %vm2139_vm0, %v2138_v0  ;;  %1778 = vmatpush3.bf16.msra.mxu0 %v1232_v6 }
 0x738   : > { %1791 = vmatprep.subr.bf16.mxu0 %v2138_v0 }
 0x7ee   : > { %v1061_v48 = vpop.f32.mrf.mxu0 }
 0x7ef   : > { %v1067_v49 = vpack.c.bf16 %v1061_v48, %v1061_v48 }
 0x7f0   : > { %v1757_v50 = vpop.f32.mrf.mxu0 }
 0x7f1   : > { %1762 = vmatmul.mubr.msk.bf16.vlgmr.msra.gmra.mxu1 %vm640_vm2, %v1067_v49 }
 0x7f2   : > { %v1064_v51 = vpop.f32.mrf.mxu0  ;;  %1773 = vmatprep.mubr.msk.bf16.mxu1 %vm2139_vm0, %v2138_v0 }
 0x7f4   : > { %v1758_v52 = vpop.f32.mrf.mxu0 }
 0x7f6   : > { %v1160_v53 = vpop.f32.mrf.mxu0 }
 0x7f7   : > { %v1166_v54 = vsel %vm640_vm2, %v1160_v53, -inf }
 0x7f8   : > { %1167 = vmax.xlane.f32.xlu0 %v1166_v54  ;;  %v1769_v55 = vpop.f32.mrf.mxu0 }
 0x7fa   : > { %v1163_v56 = vpop.f32.mrf.mxu0 }
 0x7fc   : > { %v1770_v57 = vpop.f32.mrf.mxu0 }
 0x80e   : > { %1178 = vrot.lane.b32.xlu0 %v2386_v34, %s2142_s17  ;;  %s1608_s17 = sshll.u32 %s442_s19, 3 }
 0x80f   : > { %s444_s11 = scalar_lea.vmem [#allocation10], %s1608_s17 }
 0x810   : > { %s1471_s28 = sshll.u32 %s444_s11, 4  ;;  %s1472_s28 = int_to_ptr.vmem [resolvable:$true] %s1471_s28 }
 0x811   : > { %s2042_s12 = scalar_lea.vmem %s1472_s28, 128  ;;  %p2049_p6 = scmp.lt.s32.totalorder %s1472_s28, %s2047_s20 }
 0x812   : > { %p2043_p11 = scmp.ne.s32.totalorder %s1472_s28, %s2042_s12  ;;  %p2050_p7 = scmp.lt.s32.totalorder %s2048_s16, %s2042_s12 }
 0x814   : > { %p2044_p13 = pnand %p2043_p11, %p2239_p4  ;;  %p2051_p9 = por %p2050_p7, %p2049_p6 }
 0x816   : > { %p2045_p0 = pneg %p2044_p13 }
 0x818   : > { %p2052_p12 = pnand %p2051_p9, %p2045_p0 }
 0x881   : > { %v1168_v58 = vpop.xlane.xlu0 %1167 }
 0x882   : > { %v1169_v59 = vsub.f32 %v1160_v53, %v1168_v58 }
 0x884   : > { %v1170_v60 = vmul.f32 1.442695, %v1169_v59 }
 0x885   : > { %v1179_v61 = vpop.permute.xlu0 %1178 }
 0x886   : > { %1930 = vpow2.f32 %v1170_v60  ;;  %v1184_v62 = vsel %vm702_vm3, %v1179_v61, 0 }
 0x887   : > { %1772 = vmatpush3.bf16.msra.mxu1 %v1184_v62 }
 0x888   : > { %1783 = vmatprep.subr.bf16.mxu1 %v2138_v0 }
 0x893   : > { %v1931_v63 = vpop.eup %1930 }
 0x894   : > { %v1172_v1 = vsel %vm640_vm2, %v1931_v63, 0.0 }
 0x895   : > { %1173 = vadd.xlane.f32.xlu1 %v1172_v1 }
 0x8b1   : > { %v1109_v2 = vpop.f32.mrf.mxu1 }
 0x8b2   : > { %v1115_v5 = vadd.f32 %v1109_v2, %v956_v38 }
 0x8b3   : > { %v1763_v34 = vpop.f32.mrf.mxu1 }
 0x8b5   : > { %v1112_v7 = vpop.f32.mrf.mxu1 }
 0x8b7   : > { %v1764_v8 = vpop.f32.mrf.mxu1 }
 0x91e   : > { %v1174_v9 = vpop.xlane.xlu1 %1173 }
 0x91f   : > { %1932 = vrcp.f32 %v1174_v9 }
 0x92c   : > { %v1933_v10 = vpop.eup %1932 }
 0x92d   : > { %v1176_v11 = vmul.f32 %v1933_v10, %v1931_v63 }
 0x92f   : > { %v1177_v12 = vpack.c.bf16 %v1176_v11, %v1176_v11 }
 0x931   : > { %1774 = vmatmul.mubr.msk.bf16.vlgmr.msra.gmra.mxu1 %vm640_vm2, %v1177_v12 }
 0x932   : > { %1787 = vmatprep.mubr.msk.bf16.mxu1 %vm2139_vm0, %v2138_v0  ;;  %1784 = vmatpush3.bf16.msra.mxu1 %v1912_v31 }
 0x933   : > { %1785 = vmatprep.subr.bf16.mxu1 %v2138_v0 }
 0x936   : > { %1786 = vmatpush3.bf16.msra.mxu1 %v1913_v32 }
 0x9f1   : > { %v1220_v13 = vpop.f32.mrf.mxu1 }
 0x9f2   : > { %v1226_v14 = vpack.c.bf16 %v1220_v13, %v1220_v13 }
 0x9f3   : > { %v1775_v16 = vpop.f32.mrf.mxu1 }
 0x9f4   : > { %1780 = vmatmul.mubr.msk.bf16.vlgmr.msra.gmra.mxu0 %vm640_vm2, %v1226_v14 }
 0x9f5   : > { %v1223_v17 = vpop.f32.mrf.mxu1  ;;  %1799 = vmatprep.mubr.msk.bf16.mxu0 %vm2139_vm0, %v2138_v0  ;;  %1792 = vmatpush3.bf16.msra.mxu0 %v1914_v33 }
 0x9f6   : > { %1793 = vmatprep.subr.bf16.mxu0 %v2138_v0 }
 0x9f7   : > { %v1776_v18 = vpop.f32.mrf.mxu1 }
 0x9f9   : > { %1794 = vmatpush3.bf16.msra.mxu0 %v1915_v35 }
 0x9fa   : > { %1795 = vmatprep.subr.bf16.mxu0 %v2138_v0 }
 0x9fd   : > { %1796 = vmatpush3.bf16.msra.mxu0 %v1916_v42 }
 0x9fe   : > { %1797 = vmatprep.subr.bf16.mxu0 %v2138_v0  ;;  %v1636_v0 = vld [vmem:[%s2538_s9] ss:$0 sm:$0xff] }
 0xa01   : > { %1798 = vmatpush3.bf16.msra.mxu0 %v1917_v43 }
 0xab4   : > { %v1268_v20 = vpop.f32.mrf.mxu0 }
 0xab5   : > { %v1274_v21 = vadd.f32 %v1268_v20, %v1115_v5 }
 0xab6   : > { %v1781_v22 = vpop.f32.mrf.mxu0 }
 0xab7   : > { %v1275_v23 = vsel %vm477_vm1, %v1274_v21, 0.0 }
 0xab8   : > { %1276 = vadd.xlane.f32.xlu0 %v1275_v23  ;;  %v1271_v24 = vpop.f32.mrf.mxu0 }
 0xaba   : > { %v1782_v25 = vpop.f32.mrf.mxu0 }
 0xb41   : > { %v1277_v26 = vpop.xlane.xlu0 %1276 }
 0xb42   : > { %v1279_v27 = vmul.f32 0.03125, %v1277_v26 }
 0xb44   : > { %v1280_v28 = vsub.f32 %v1274_v21, %v1279_v27 }
 0xb46   : > { %v1281_v29 = vmul.f32 %v1280_v28, %v1280_v28 }
 0xb48   : > { %v1282_v30 = vsel %vm477_vm1, %v1281_v29, 0.0 }
 0xb49   : > { %1283 = vadd.xlane.f32.xlu1 %v1282_v30 }
 0xbd2   : > { %v1284_v36 = vpop.xlane.xlu1 %1283 }
 0xbd3   : > { %v1285_v37 = vmul.f32 0.03125, %v1284_v36 }
 0xbd5   : > { %v1286_v38 = vadd.f32 1e-05, %v1285_v37 }
 0xbd7   : > { %1934 = vrsqrt.f32 %v1286_v38 }
 0xbe4   : > { %v1935_v39 = vpop.eup %1934 }
 0xbe5   : > { %v1288_v40 = vmul.f32 %v1935_v39, %v1280_v28 }
 0xbe7   : > { %v1289_v41 = vpack.c.bf16 %v1288_v40, %v1288_v40 }
 0xbe9   : > { %1788 = vmatmul.mubr.msk.bf16.vlgmr.msra.gmra.mxu1 %vm477_vm1, %v1289_v41 }
 0xca9   : > { %v1350_v45 = vpop.f32.mrf.mxu1 }
 0xcaa   : > { %v1351_v46 = vadd.f32 %v1632_v44, %v1350_v45 }
 0xcab   : > { %v1789_v47 = vpop.f32.mrf.mxu1 }
 0xcac   : > { %v1356_v3 = vmax.f32 %v1351_v46, 0.0 }
 0xcad   : > { %v1353_v15 = vpop.f32.mrf.mxu1 }
 0xcae   : > { %v1357_v19 = vpack.c.bf16 %v1356_v3, %v1356_v3 }
 0xcaf   : > { %v1790_v48 = vpop.f32.mrf.mxu1 }
 0xcb0   : > { %1800 = vmatmul.mubr.msk.bf16.vlgmr.msra.gmra.mxu0 %vm1397_vm4, %v1357_v19 }
 0xd70   : > { %v1435_v49 = vpop.f32.mrf.mxu0 }
 0xd71   : > { %v1436_v50 = vadd.f32 %v1636_v0, %v1435_v49 }
 0xd72   : > { %v1801_v51 = vpop.f32.mrf.mxu0 }
 0xd73   : > { %v1441_v52 = vadd.f32 %v1436_v50, %v1288_v40 }
 0xd74   : > { %v1438_v53 = vpop.f32.mrf.mxu0 }
 0xd75   : > { %v1442_v54 = vsel %vm477_vm1, %v1441_v52, 0.0 }
 0xd76   : > { %1443 = vadd.xlane.f32.xlu1 %v1442_v54  ;;  %v1802_v55 = vpop.f32.mrf.mxu0 }
 0xdff   : > { %v1444_v56 = vpop.xlane.xlu1 %1443 }
 0xe00   : > { %v1445_v57 = vmul.f32 0.03125, %v1444_v56 }
 0xe02   : > { %v1446_v58 = vsub.f32 %v1441_v52, %v1445_v57 }
 0xe04   : > { %v1447_v59 = vmul.f32 %v1446_v58, %v1446_v58 }
 0xe06   : > { %v1448_v60 = vsel %vm477_vm1, %v1447_v59, 0.0 }
 0xe07   : > { %1449 = vadd.xlane.f32.xlu1 %v1448_v60 }
 0xe90   : > { %v1450_v61 = vpop.xlane.xlu1 %1449 }
 0xe91   : > { %v1451_v62 = vmul.f32 0.03125, %v1450_v61 }
 0xe93   : > { %v1452_v63 = vadd.f32 1e-05, %v1451_v62 }
 0xe95   : > { %1936 = vrsqrt.f32 %v1452_v63 }
 0xea2   : > { %v1937_v1 = vpop.eup %1936 }
 0xea3   : > { %v1454_v2 = vmul.f32 %v1937_v1, %v1446_v58 }
 0xea5   : > { %1455 = vst.msk [vmem:[%s444_s11] sm:$0xff] %vm477_vm1, %v1454_v2 }
 0xea6   : > { %2055 = shalt.err (!%p2052_p12)
}
 0xea7   : > { %s2056_s4 = scalar_lea.hbm %s1469_s29, 128  ;;  %s2060_s17 = scalar_lea.hbm %s2539_s10, 256 }
 0xea8   : > { %p2057_p2 = scmp.ne.s32.totalorder %s1469_s29, %s2056_s4  ;;  %p2061_p5 = scmp.lt.s32.totalorder %s1469_s29, %s2539_s10 }
 0xea9   : > { %p2062_p10 = scmp.lt.s32.totalorder %s2060_s17, %s2056_s4 }
 0xeaa   : > { %p2058_p1 = pnand %p2057_p2, %p2239_p4 }
 0xeab   : > { %p2063_p11 = por %p2062_p10, %p2061_p5 }
 0xeac   : > { %p2059_p3 = pneg %p2058_p1 }
 0xeae   : > { %p2064_p13 = pnand %p2063_p11, %p2059_p3 }
 0xeb0   : > { %2067 = shalt.err (!%p2064_p13)
}
 0xeb1   : > { %1819 = dma.vmem_to_hbm [thread:$0]  (%p2239_p4), %s1472_s28, 128, %s1469_s29, %s1457_s30  }
 0xeb2 PF: > { %p1846_p0 = scmp.ge.s32.totalorder %s2130_s18, 2  ;;  %s1483_s22 = sand.u32 1, %s2110_s13  }
 0xeb3   : > { %s1484_s24 = scalar_lea.sflag [#allocation4], %s1483_s22 }
 0xeb4   : > { %p1835_p6 = pnand %p1846_p0, %p2246_p8 }
 0xeb6   : > { %p1836_p7 = pneg %p1835_p6 }
 0xeb8   : > { %2105 = dma.done.wait (%p1836_p7), %s1484_s24, 128  }
 0xeb9   : > { %2107 = vsyncadd (%p1836_p7), %s1484_s24, 4294967168  ;;  %s26_s18 = sadd.s32 1, %s2130_s18   ;;  %s2552_s12 = sld [smem:[#allocation17_spill]] }
 0xeba   : > { %p23_p9 = scmp.ge.s32.totalorder %s26_s18, 4   ;;  %s2553_s16 = sld [smem:[#allocation15_spill]] }
 0xebb   : > { %s2554_s17 = sld [smem:[#allocation16_spill]]  ;;  %s2555_s13 = smov %s2114_s14 }
 0xebc   : > { %s2556_s14 = smov %s2118_s15  ;;  %25 = sbr.rel (!%p23_p9) target bundleno = 9 (0x9), region = 115 }
 0xebf   : > { %s2557_s15 = smov %s2552_s12 }
 0xec1   :  { %1489 = vsyncpa [#allocation3], 1 }
 0xec2   :  { %1491 = vsyncpa [#allocation3 + $0x1], 1 }
 0xec3   :  { %1492 = vsyncpa [#allocation6], 1 }
 0xec4   :  { %1493 = vsyncpa [#allocation9], 1 }
 0xec5   :  { %1494 = vsyncpa [#allocation4], 1 }
 0xec6   :  { %1496 = vsyncpa [#allocation4 + $0x1], 1 }

</bundles_post_ra>
